<compile_context>
chip_gen: v7x
topology: tpu7x:2x2x1
jax: 0.10.0
libtpu: 0.0.40
codegen_flags: <defaults>
</compile_context>

<pallas_src>
import functools

import jax
import jax.numpy as jnp
from jax.experimental import pallas as pl
from jax.experimental.pallas import tpu as pltpu


def _ceil_to(v: int, m: int) -> int:
    return ((v + m - 1) // m) * m


# ----------------------------- kernels ------------------------------------ #

def _rolann_kernel(x_ref, w_ref, b_ref, o_ref, *, compute_dtype):
    # x_ref: (tn, D) f32, w_ref: (D, Cp) compute_dtype, b_ref: (1, Cp) f32,
    # o_ref: (tn, C) f32.
    x = x_ref[...].astype(compute_dtype)          # in-kernel cast: X read once as f32
    z = jnp.dot(x, w_ref[...], preferred_element_type=jnp.float32)
    y = jax.nn.sigmoid(z + b_ref[...])            # bias + 'logs' activation in f32
    o_ref[...] = y[:, : o_ref.shape[-1]].astype(o_ref.dtype)


def _rolann_kernel_ktiled(x_ref, w_ref, b_ref, o_ref, acc_ref, *, compute_dtype):
    # Grid = (N tiles, K tiles); K axis ("arbitrary", innermost) accumulates into an
    # f32 VMEM scratch and finalizes (bias + sigmoid + store) on the last K step.
    k = pl.program_id(1)

    @pl.when(k == 0)
    def _init():
        acc_ref[...] = jnp.zeros_like(acc_ref)

    x = x_ref[...].astype(compute_dtype)
    acc_ref[...] += jnp.dot(x, w_ref[...], preferred_element_type=jnp.float32)

    @pl.when(k == pl.num_programs(1) - 1)
    def _finalize():
        y = jax.nn.sigmoid(acc_ref[...] + b_ref[...])
        o_ref[...] = y[:, : o_ref.shape[-1]].astype(o_ref.dtype)


# ----------------------------- wrapper ------------------------------------ #

def prepare_rolann_weights(w_stack: jax.Array, compute_dtype=jnp.bfloat16):
    """One-time preprocessing of ROLANN's stacked weights.

    Returns (wf, bias2d): wf is (D, Cp) in compute_dtype with the class dim padded to
    a multiple of 128 (lane-dense MXU operand); bias2d is (1, Cp) f32.  Cache the
    result across forward calls when the weights are static (serving workloads).
    """
    c, d1 = w_stack.shape
    cp = _ceil_to(max(c, 1), 128)
    bias = w_stack[:, 0].astype(jnp.float32)        # (C,)
    wf = jnp.transpose(w_stack[:, 1:])               # (D, C)
    if cp != c:
        wf = jnp.pad(wf, ((0, 0), (0, cp - c)))
        bias = jnp.pad(bias, (0, cp - c))
    return wf.astype(compute_dtype), bias.reshape(1, cp)


def rolann_forward(x: jax.Array, w_stack: jax.Array, *,
                   tile_n: int = 512,
                   d_tile: int | None = None,
                   compute_dtype=jnp.bfloat16,
                   vmem_budget_bytes: int = 40 * 1024 * 1024) -> jax.Array:
    """Pallas equivalent of ROLANN.forward (activation='logs', eval / dropout 0.0).

    x:       (N, D)   float32
    w_stack: (C, D+1) float32 -- per-class weight vectors, bias term first.
    returns: (N, C)   sigmoid([1, X] @ w_stack.T), same dtype as x.

    Pass compute_dtype=jnp.float32 for (near) bit-parity with the f32 PyTorch module
    at ~2x the DMA / MXU cost.
    """
    n, d = x.shape
    c, d1 = w_stack.shape
    assert d1 == d + 1, "w_stack must be (num_classes, D+1)"
    out_dtype = x.dtype

    if c == 0:  # ROLANN.forward returns zeros while self.w is empty.
        return jnp.zeros((n, 0), out_dtype)

    wf, bias2d = prepare_rolann_weights(w_stack, compute_dtype)
    cp = wf.shape[1]
    itemsize = jnp.dtype(compute_dtype).itemsize

    # ---- row (N) tiling ----------------------------------------------------
    n_eff = _ceil_to(n, 8)
    tn = min(int(tile_n), n_eff)
    # Keep >= 4 grid steps whenever the batch allows it so v7x's two TensorCores
    # (sharding the "parallel" N axis) both get work.
    min_steps = 4
    if n_eff // tn < min_steps and n_eff >= min_steps * 16:
        tn = max(16, (n_eff // min_steps) // 16 * 16)
    tn = (tn // 16) * 16 if tn >= 16 else _ceil_to(tn, 8)
    n_pad = _ceil_to(n, tn)

    # ---- feature (K) tiling: only when the single-block footprint is too big
    def _footprint(dk_, ktiled_):
        x_b = 2 * tn * dk_ * 4                               # f32 X tile, double-buffered
        w_b = (2 if ktiled_ else 1) * dk_ * cp * itemsize    # Buffered(1) when constant
        b_b = cp * 4
        o_b = 2 * tn * c * 4
        acc_b = tn * cp * 4 if ktiled_ else 0
        return x_b + w_b + b_b + o_b + acc_b

    if d_tile is not None:
        dk = min(int(d_tile), d)
        ktiled = dk < d
        if ktiled:
            assert dk % 128 == 0, "d_tile must be a multiple of 128"
    elif _footprint(d, False) <= vmem_budget_bytes:
        dk, ktiled = d, False
    else:
        ktiled = True
        dk = 128
        for cand in (2048, 1024, 512, 256):
            if cand < d and _footprint(cand, True) <= vmem_budget_bytes:
                dk = cand
                break

    x_p = x.astype(jnp.float32)          # X stays f32 in HBM; cast happens in-kernel
    if n_pad != n:
        x_p = jnp.pad(x_p, ((0, n_pad - n), (0, 0)))

    d_pad = d
    if ktiled:
        d_pad = _ceil_to(d, dk)
        if d_pad != d:
            x_p = jnp.pad(x_p, ((0, 0), (0, d_pad - d)))
            wf = jnp.pad(wf, ((0, d_pad - d), (0, 0)))

    vmem_limit = int(min(max(_footprint(dk, ktiled) + (4 << 20), 32 << 20), 64 << 20))
    cost = pl.CostEstimate(
        flops=2 * n_pad * d_pad * cp,
        transcendentals=n_pad * cp,
        bytes_accessed=(n_pad * d_pad * 4 + d_pad * cp * itemsize
                        + cp * 4 + n_pad * c * 4),
    )
    out_shape = jax.ShapeDtypeStruct((n_pad, c), jnp.float32)

    if not ktiled:
        out = pl.pallas_call(
            functools.partial(_rolann_kernel, compute_dtype=compute_dtype),
            out_shape=out_shape,
            grid=(n_pad // tn,),
            in_specs=[
                pl.BlockSpec((tn, d), lambda i: (i, 0)),            # streamed X rows
                pl.BlockSpec((d, cp), lambda i: (0, 0),             # resident weights
                             pipeline_mode=pl.Buffered(1)),
                pl.BlockSpec((1, cp), lambda i: (0, 0),             # resident bias
                             pipeline_mode=pl.Buffered(1)),
            ],
            out_specs=pl.BlockSpec((tn, c), lambda i: (i, 0)),      # unpadded C store
            compiler_params=pltpu.CompilerParams(
                dimension_semantics=("parallel",),
                vmem_limit_bytes=vmem_limit,
            ),
            cost_estimate=cost,
        )(x_p, wf, bias2d)
    else:
        out = pl.pallas_call(
            functools.partial(_rolann_kernel_ktiled, compute_dtype=compute_dtype),
            out_shape=out_shape,
            grid=(n_pad // tn, d_pad // dk),
            in_specs=[
                pl.BlockSpec((tn, dk), lambda i, k: (i, k)),
                pl.BlockSpec((dk, cp), lambda i, k: (k, 0)),
                pl.BlockSpec((1, cp), lambda i, k: (0, 0),
                             pipeline_mode=pl.Buffered(1)),
            ],
            out_specs=pl.BlockSpec((tn, c), lambda i, k: (i, 0)),
            scratch_shapes=[pltpu.VMEM((tn, cp), jnp.float32)],
            compiler_params=pltpu.CompilerParams(
                dimension_semantics=("parallel", "arbitrary"),
                vmem_limit_bytes=vmem_limit,
            ),
            cost_estimate=cost,
        )(x_p, wf, bias2d)

    return out[:n].astype(out_dtype)


# ------------------------------- demo -------------------------------------- #

if __name__ == "__main__":
    key = jax.random.PRNGKey(0)
    kx, kw, kx2, kw2 = jax.random.split(key, 4)

    # --- Test 1: module-typical small shapes (batch=8, features=32, classes=4);
    #     single-block (no K tiling) path.
    N, D, C = 8, 32, 4
    x = jax.random.normal(kx, (N, D), dtype=jnp.float32)
    w_stack = 0.1 * jax.random.normal(kw, (C, D + 1), dtype=jnp.float32)

    y = jax.block_until_ready(rolann_forward(x, w_stack))
    assert y.shape == (N, C) and y.dtype == x.dtype

    # f32 PyTorch-semantics reference (loose tol: kernel matmul runs in bf16).
    xp = jnp.concatenate([jnp.ones((N, 1), jnp.float32), x], axis=1)
    ref_f32 = jax.nn.sigmoid(xp @ w_stack.T)
    assert jnp.allclose(y, ref_f32, atol=3e-2, rtol=3e-2)

    # Same bf16-rounded operands, f32 math (tight tol).
    x_bf = x.astype(jnp.bfloat16).astype(jnp.float32)
    w_bf = w_stack[:, 1:].astype(jnp.bfloat16).astype(jnp.float32)
    ref_bf = jax.nn.sigmoid(x_bf @ w_bf.T + w_stack[:, 0][None, :])
    assert jnp.allclose(y, ref_bf, atol=2e-4, rtol=2e-4)

    # --- Test 2: exercise the K-tiled accumulator path (grid over N and D).
    N2, D2, C2 = 64, 256, 4
    x2 = jax.random.normal(kx2, (N2, D2), dtype=jnp.float32)
    w2 = 0.05 * jax.random.normal(kw2, (C2, D2 + 1), dtype=jnp.float32)
    y2 = jax.block_until_ready(rolann_forward(x2, w2, d_tile=128))
    assert y2.shape == (N2, C2)
    x2_bf = x2.astype(jnp.bfloat16).astype(jnp.float32)
    w2_bf = w2[:, 1:].astype(jnp.bfloat16).astype(jnp.float32)
    ref2 = jax.nn.sigmoid(x2_bf @ w2_bf.T + w2[:, 0][None, :])
    assert jnp.allclose(y2, ref2, atol=5e-4, rtol=5e-4)

    # --- Empty-weight early return (self.w == [] in the PyTorch module).
    y0 = rolann_forward(x, jnp.zeros((0, D + 1), jnp.float32))
    assert y0.shape == (N, 0)

    print("KERNEL_OK")
</pallas_src>

<mosaic_0001>
module attributes {stable_mosaic.version = 11 : i64} {
  func.func @_rolann_kernel(%arg0: i32, %arg1: memref<8x32xf32, #tpu.memory_space<vmem>>, %arg2: memref<32x128xbf16, #tpu.memory_space<vmem>>, %arg3: memref<1x128xf32, #tpu.memory_space<vmem>>, %arg4: memref<8x4xf32, #tpu.memory_space<vmem>>) attributes {dimension_semantics = [#tpu.dimension_semantics<parallel>], iteration_bounds = array<i64: 1>, scalar_prefetch = 0 : i64, scratch_operands = 0 : i64, tpu.core_type = #tpu.core_type<tc>, window_params = [{transform_indices = @transform_0, window_bounds = array<i64: 8, 32>}, {pipeline_mode = #tpu.pipeline_mode<synchronous>, transform_indices = @transform_1, window_bounds = array<i64: 32, 128>}, {pipeline_mode = #tpu.pipeline_mode<synchronous>, transform_indices = @transform_2, window_bounds = array<i64: 1, 128>}, {transform_indices = @transform_3, window_bounds = array<i64: 8, 4>}]} {
    %c0 = arith.constant 0 : index
    %c0_0 = arith.constant 0 : index
    %0 = vector.load %arg1[%c0, %c0_0] : memref<8x32xf32, #tpu.memory_space<vmem>>, vector<8x32xf32>
    %1 = arith.truncf %0 : vector<8x32xf32> to vector<8x32xbf16>
    %c0_1 = arith.constant 0 : index
    %c0_2 = arith.constant 0 : index
    %2 = vector.load %arg2[%c0_1, %c0_2] : memref<32x128xbf16, #tpu.memory_space<vmem>>, vector<32x128xbf16>
    %cst = arith.constant dense<0.000000e+00> : vector<8x128xf32>
    %3 = tpu.matmul %1, %2, %cst {dimension_numbers = #tpu.dot_dimension_numbers<[1], [0], [0], [1], [0, 0, 1, 1], [], []>} : vector<8x32xbf16>, vector<32x128xbf16>, vector<8x128xf32> -> vector<8x128xf32>
    %c0_3 = arith.constant 0 : index
    %c0_4 = arith.constant 0 : index
    %4 = vector.load %arg3[%c0_3, %c0_4] : memref<1x128xf32, #tpu.memory_space<vmem>>, vector<1x128xf32>
    %5 = vector.broadcast %4 : vector<1x128xf32> to vector<8x128xf32>
    %6 = arith.addf %3, %5 : vector<8x128xf32>
    %7 = arith.negf %6 : vector<8x128xf32>
    %8 = math.exp %7 : vector<8x128xf32>
    %cst_5 = arith.constant 1.000000e+00 : f32
    %9 = vector.broadcast %cst_5 : f32 to vector<8x128xf32>
    %10 = arith.addf %9, %8 : vector<8x128xf32>
    %11 = arith.divf %9, %10 : vector<8x128xf32>
    %12 = vector.extract_strided_slice %11 {offsets = [0, 0], sizes = [8, 4], strides = [1, 1]} : vector<8x128xf32> to vector<8x4xf32>
    %c0_6 = arith.constant 0 : index
    %c0_7 = arith.constant 0 : index
    %13 = vector.load %arg4[%c0_6, %c0_7] : memref<8x4xf32, #tpu.memory_space<vmem>>, vector<8x4xf32>
    tpu.vector_store %arg4[%c0_6, %c0_7], %12 {strides = array<i32>} : memref<8x4xf32, #tpu.memory_space<vmem>>, vector<8x4xf32>,
    return
  }
  func.func @transform_0(%arg0: i32) -> (i32, i32) {
    %c0_i32 = arith.constant 0 : i32
    %c0_i32_0 = arith.constant 0 : i32
    return %arg0, %c0_i32 : i32, i32
  }
  func.func @transform_1(%arg0: i32) -> (i32, i32) {
    %c0_i32 = arith.constant 0 : i32
    %c0_i32_0 = arith.constant 0 : i32
    %c0_i32_1 = arith.constant 0 : i32
    return %c0_i32, %c0_i32_0 : i32, i32
  }
  func.func @transform_2(%arg0: i32) -> (i32, i32) {
    %c0_i32 = arith.constant 0 : i32
    %c0_i32_0 = arith.constant 0 : i32
    %c0_i32_1 = arith.constant 0 : i32
    return %c0_i32, %c0_i32_0 : i32, i32
  }
  func.func @transform_3(%arg0: i32) -> (i32, i32) {
    %c0_i32 = arith.constant 0 : i32
    %c0_i32_0 = arith.constant 0 : i32
    return %arg0, %c0_i32 : i32, i32
  }
}

</mosaic_0001>

<bundles_post_ra>
// kernel: tpu_custom_call.1
= control target key start
LH: loop header
LB: loop body
LE: loop exit
PB: predicated region body
PF: predicated region fallthrough
CT: control target
= control target key end

     0   :  { %8 = vsyncpa [#allocation3], 0  ;;  %s263_s0 = inlined_call_operand.hbm [shape: f32[8,32], index: 0, kind: input, shape index: {}]   ;;  %s264_s1 = inlined_call_operand.hbm [shape: bf16[32,128], index: 1, kind: input, shape index: {}]   ;;  %s265_s2 = inlined_call_operand.vmem [shape: f32[1,128], index: 2, kind: input, shape index: {}]   ;;  %s266_s3 = inlined_call_operand.vmem [shape: f32[8,4], index: 3, kind: output, shape index: {}]  }
   0x1   :  { %9 = vsyncpa [#allocation5], 0  ;;  %s200_s12 = smov [#allocation2]   ;;  %s201_s14 = smov [#allocation4]  }
   0x2   :  { %s16_s13 = sshll.u32 %s200_s12, 4  ;;  %s25_s15 = sshll.u32 %s201_s14, 4  ;;  %s17_s13 = int_to_ptr.vmem [resolvable:$true] %s16_s13  ;;  %s226_s15 = int_to_ptr.vmem [resolvable:$true] %s25_s15 }
   0x3   :  { %s152_s18 = scalar_lea.hbm %s263_s0, 128 }
   0x4   :  { %p153_p0 = scmp.ne.s32.totalorder %s263_s0, %s152_s18  ;;  %p156_p1 = scmp.lt.u32.totalorder %s152_s18, %s263_s0 }
   0x6   :  { %p158_p2 = pnand %p156_p1, %p153_p0 }
   0x8   :  { %161 = shalt.err (!%p158_p2)
}
   0x9   :  { %s162_s23 = scalar_lea.vmem %s17_s13, 128  ;;  %p167_p4 = scmp.lt.s32.totalorder %s17_s13, %s17_s13 }
   0xa   :  { %p163_p3 = scmp.ne.s32.totalorder %s17_s13, %s162_s23  ;;  %p168_p5 = scmp.lt.s32.totalorder %s162_s23, %s162_s23 }
   0xc   :  { %p169_p6 = por %p168_p5, %p167_p4 }
   0xe   :  { %p170_p7 = pnand %p169_p6, %p163_p3 }
  0x10   :  { %173 = shalt.err (!%p170_p7)
}
  0x11   :  { %19 = dma.hbm_to_vmem [thread:$0]  %s263_s0, 128, %s17_s13, [#allocation3]  }
  0x12   :  { %s174_s28 = scalar_lea.hbm %s264_s1, 256 }
  0x13   :  { %p175_p8 = scmp.ne.s32.totalorder %s264_s1, %s174_s28  ;;  %p178_p9 = scmp.lt.u32.totalorder %s174_s28, %s264_s1 }
  0x15   :  { %p180_p10 = pnand %p178_p9, %p175_p8 }
  0x17   :  { %183 = shalt.err (!%p180_p10)
}
  0x18   :  { %s184_s6 = scalar_lea.vmem %s226_s15, 256  ;;  %p189_p12 = scmp.lt.s32.totalorder %s226_s15, %s226_s15 }
  0x19   :  { %p185_p11 = scmp.ne.s32.totalorder %s226_s15, %s184_s6  ;;  %p190_p13 = scmp.lt.s32.totalorder %s184_s6, %s184_s6 }
  0x1b   :  { %p191_p0 = por %p190_p13, %p189_p12 }
  0x1d   :  { %p192_p1 = pnand %p191_p0, %p185_p11 }
  0x1f   :  { %195 = shalt.err (!%p192_p1)
}
  0x20   :  { %s202_s0 = smov 64   ;;  %s203_s7 = smov 4  }
  0x21   :  { %31 = dma.hbm_to_vmem [thread:$0]  %s264_s1, 256, %s226_s15, [#allocation5], %s202_s0, %s202_s0, %s203_s7  }
  0x22   :  { %196 = dma.done.wait [#allocation3], 128  }
  0x23   :  { %197 = vsyncadd [#allocation3], 4294967168 }
  0x24   :  { %198 = dma.done.wait [#allocation5], 256  }
  0x25   :  { %199 = vsyncadd [#allocation5], 4294967040  ;;  %v204_v0 = vmov 0.0   ;;  %vm205_vm0 = vmmov 0   ;;  %v146_v1 = vld [vmem:[#allocation4] sm:$0xff]   ;;  %v147_v2 = vld [vmem:[#allocation4 + $0x8] sm:$0xff]  }
  0x26   :  { %132 = vmatprep.subr.bf16.mxu0 %v204_v0  ;;  %136 = vmatprep.mubr.msk.bf16.mxu0 %vm205_vm0, %v204_v0  ;;  %v41_v3 = vld [vmem:[#allocation2] sm:$0xff]  ;;  %vm66_vm1 = vcmask 261120   ;;  %v124_v5 = vld [vmem:[%s265_s2] ss:$0 sm:$0xff]  ;;  %vm116_vm2 = vcmask 31744  }
  0x27   :  { %133 = vmatpush3.bf16.msra.mxu0 %v146_v1  ;;  %v42_v4 = vpack.c.bf16 %v41_v3, %v41_v3 }
  0x28   :  { %134 = vmatprep.subr.bf16.mxu0 %v204_v0 }
  0x2b   :  { %135 = vmatpush3.bf16.msra.mxu0 %v147_v2 }
  0x2e   :  { %137 = vmatmul.mubr.msk.bf16.vlgmr.msra.gmra.mrb[0].mxu0 %vm66_vm1, %v42_v4 }
 0x101   :  { %v104_v6 = vpop.f32.mrb[0].mxu0 }
 0x102   :  { %v105_v7 = vadd.f32 %v124_v5, %v104_v6  ;;  %v138_v8 = vpop.f32.mrb[1].mxu0 }
 0x103   :  { %v107_v9 = vpop.f32.mrb[2].mxu0 }
 0x104   :  { %v128_v10 = vmul.f32 -1.442695, %v105_v7  ;;  %v139_v11 = vpop.f32.mrb[3].mxu0 }
 0x106   :  { %148 = vpow2.f32 %v128_v10 }
 0x110   :  { %v149_v12 = vpop.eup %148 }
 0x111   :  { %v113_v13 = vadd.f32 1.0, %v149_v12 }
 0x113   :  { %150 = vrcp.f32 %v113_v13 }
 0x11d   :  { %v151_v14 = vpop.eup %150 }
 0x11e   :  { %117 = vst.msk [vmem:[%s266_s3] sm:$0xff] %vm116_vm2, %v151_v14 }
 0x11f   :  { %122 = vsyncpa [#allocation3], 1 }
 0x120   :  { %123 = vsyncpa [#allocation5], 1 }

</bundles_post_ra>
